<compile_context>
chip_gen: v6e
topology: v6e:2x2x1
jax: 0.10.0
libtpu: 0.0.40
codegen_flags: <defaults>
</compile_context>

<pallas_src>
import jax
import jax.numpy as jnp
from jax.experimental import pallas as pl
from jax.experimental.pallas import tpu as pltpu

SELU_ALPHA = 1.6732632423543772
SELU_SCALE = 1.0507009873554805

# Memory-space enum name differs across JAX versions; resolve once.
_MS = getattr(pltpu, "MemorySpace", None) or getattr(pltpu, "TPUMemorySpace")
_VMEM_SPEC = pl.BlockSpec(memory_space=_MS.VMEM)


def _selu(x):
    # exp only of the non-positive branch value -> no inf intermediates (grad-safe).
    return SELU_SCALE * jnp.where(
        x > 0, x, SELU_ALPHA * (jnp.exp(jnp.minimum(x, 0.0)) - 1.0))


# ---------------- One-time parameter preparation (outside the hot path) ----------------

def prepare_params(params, L):
    """Build the compact banded conv weight, the fused MLP weight slab and the fused
    bias slab, all once.  Returns (ops, dims).

    t_conv[ci, t, par*F + c*L_half + j] = conv_w[c, ci, t - (2j + par)]  (0 outside band)
      so  sum_ci  x[n, ci, :] @ t_conv[ci]  yields every conv output position for the
      whole batch; columns [0:F) are the even positions, [F:2F) the odd ones, each in
      PyTorch's channel-major (c*L_half + j) flatten order, so MaxPool1d(2,2) is simply
      max(even half, odd half).
    """
    conv_w = jnp.asarray(params["conv_w"], jnp.float32)   # (C_out, C_in, K)
    conv_b = jnp.asarray(params["conv_b"], jnp.float32)   # (C_out,)
    C_out, C_in, K = conv_w.shape
    L_out = L - K + 1
    L_half = L_out // 2                                   # MaxPool1d(2,2) floors
    F = C_out * L_half

    t = jnp.arange(L)
    j = jnp.arange(L_half)
    par = jnp.arange(2)
    k_idx = t[None, None, :] - (2 * j[:, None, None] + par[None, :, None])  # (L_half,2,L)
    valid = (k_idx >= 0) & (k_idx < K)
    wg = conv_w[:, :, jnp.clip(k_idx, 0, K - 1)]          # (C_out, C_in, L_half, 2, L)
    wg = jnp.where(valid[None, None], wg, 0.0)
    t_conv = jnp.transpose(wg, (1, 4, 3, 0, 2)).reshape(C_in, L, 2 * F)

    w1 = jnp.asarray(params["w1"], jnp.float32)           # (H, F)
    w2 = jnp.asarray(params["w2"], jnp.float32)           # (H, H)
    w3 = jnp.asarray(params["w3"], jnp.float32)           # (out_dim, H)
    b1 = jnp.asarray(params["b1"], jnp.float32)
    b2 = jnp.asarray(params["b2"], jnp.float32)
    b3 = jnp.asarray(params["b3"], jnp.float32)
    H = w1.shape[0]
    out_dim = w3.shape[0]
    O_pad = max(128, ((out_dim + 127) // 128) * 128)      # lane-dense output columns

    R = max(F, H)

    def blk(m, cols):                                     # zero-padded (R, cols) block
        return jnp.zeros((R, cols), jnp.float32).at[:m.shape[0], :m.shape[1]].set(m)

    # Fused MLP weight slab: [ w1.T | w2.T | w3.T zero-padded to O_pad columns ]
    w_mlp = jnp.concatenate([blk(w1.T, H), blk(w2.T, H), blk(w3.T, O_pad)], axis=1)

    Wb = max(F, H, O_pad)

    def row(v):
        return jnp.zeros((Wb,), jnp.float32).at[:v.shape[0]].set(v)

    # Fused bias slab: conv bias (repeated per pooled position) | b1 | b2 | b3 (padded)
    b_all = jnp.stack([row(jnp.repeat(conv_b, L_half)), row(b1), row(b2), row(b3)])

    ops = {
        "t_conv": t_conv.astype(jnp.bfloat16),            # ~C_in*L*2F*2 bytes (78 KiB here)
        "w_mlp": w_mlp.astype(jnp.bfloat16),
        "b_all": b_all.astype(jnp.float32),
    }
    dims = dict(C_in=C_in, C_out=C_out, K=K, L=L, L_half=L_half,
                F=F, H=H, out_dim=out_dim, O_pad=O_pad)
    return ops, dims


# ---------------- Fused Pallas kernel (entire forward pass) ----------------

def _make_kernel(C_in, F, H, O_pad):
    def kernel(x_ref, t_ref, w_ref, b_ref, out_ref):
        """x_ref:  (N, C_in, L) f32   raw input, PyTorch NCL layout
           t_ref:  (C_in, L, 2F) bf16 banded conv weight (even|odd pooling halves)
           w_ref:  (R, 2H + O_pad) bf16 fused [w1.T | w2.T | w3.T(pad)] slab
           b_ref:  (4, Wb) f32 fused [conv bias | b1 | b2 | b3(pad)] rows
           out_ref:(N, O_pad) f32 lane-dense output slab
        """
        N = x_ref.shape[0]

        # ---- Conv1d at every output position: C_in accumulating banded matmuls ----
        # Per-channel (N, L) LHS gathered with leading-index ref reads + a sublane
        # slice (N is tiny and static here).  For production batch sizes this becomes
        # a batch-tiled grid where the BlockSpec DMA delivers (TN, L) channel slabs.
        xb = [x_ref[n] for n in range(N)]                       # N x (C_in, L)
        y = None
        for ci in range(C_in):                                  # static unroll
            x_ci = jnp.concatenate(
                [xb[n][ci:ci + 1, :] for n in range(N)], axis=0)          # (N, L)
            part = jnp.dot(x_ci.astype(jnp.bfloat16), t_ref[ci],
                           preferred_element_type=jnp.float32)            # (N, 2F)
            y = part if y is None else y + part

        # ReLU(MaxPool1d(2,2)(conv + bias)): the bias is constant over a pool window
        # and ReLU is monotone, so both commute with the max.
        flat = jnp.maximum(jnp.maximum(y[:, :F], y[:, F:]) + b_ref[0:1, :F], 0.0)

        # ---- MLP: fc1 -> SELU -> (Dropout) -> fc2 -> SELU -> (Dropout) -> fc3 ----
        # TODO(synk): Dropout(0.5) treated as identity (eval-mode parity).
        h = _selu(jnp.dot(flat.astype(jnp.bfloat16), w_ref[0:F, 0:H],
                          preferred_element_type=jnp.float32) + b_ref[1:2, :H])
        h = _selu(jnp.dot(h.astype(jnp.bfloat16), w_ref[0:H, H:2 * H],
                          preferred_element_type=jnp.float32) + b_ref[2:3, :H])
        out = (jnp.dot(h.astype(jnp.bfloat16), w_ref[0:H, 2 * H:2 * H + O_pad],
                       preferred_element_type=jnp.float32) + b_ref[3:4, :O_pad])
        out_ref[...] = out.astype(out_ref.dtype)                # lane-dense store
    return kernel


# ---------------- Forward wrapper ----------------

def build_forward(dims):
    C_in, F, H, O_pad = dims["C_in"], dims["F"], dims["H"], dims["O_pad"]
    out_dim, L = dims["out_dim"], dims["L"]
    kernel = _make_kernel(C_in, F, H, O_pad)

    @jax.jit
    def forward(x, ops):
        """x: (N, C_in, L) float32 -- passed straight to the kernel (no im2col)."""
        N = x.shape[0]
        flops = 2 * N * (C_in * L * 2 * F + F * H + H * H + H * O_pad)
        bytes_accessed = (x.size * x.dtype.itemsize
                          + ops["t_conv"].size * 2 + ops["w_mlp"].size * 2
                          + ops["b_all"].size * 4 + N * O_pad * 4)
        # Production batch sizes: tile N with grid=(pl.cdiv(N, TN),), give x/out
        # BlockSpecs with index_map lambda i: (i, 0, 0) / (i, 0) and keep the weight
        # specs' index_map constant so they stay VMEM-resident across iterations; mark
        # the axis "parallel" (shards across v7x's 2 TensorCores).  Budget TN against
        # scoped VMEM: ~16 MiB default on v5e, 32 MiB on v6e/v7x (64 MiB physical).
        out = pl.pallas_call(
            kernel,
            out_shape=jax.ShapeDtypeStruct((N, O_pad), jnp.float32),
            in_specs=[_VMEM_SPEC] * 4,
            out_specs=_VMEM_SPEC,
            cost_estimate=pl.CostEstimate(flops=flops, transcendentals=2 * N * H,
                                          bytes_accessed=bytes_accessed),
        )(x, ops["t_conv"], ops["w_mlp"], ops["b_all"])
        # Kernel writes a lane-dense (N, 128) slab; the real logits are the first cols.
        return out[:, :out_dim]

    return forward


# ---------------- Pure-JAX reference (for correctness check) ----------------

def reference_forward(x, params):
    conv_w, conv_b = params["conv_w"], params["conv_b"]
    N = x.shape[0]
    C_out = conv_w.shape[0]
    y = jax.lax.conv_general_dilated(
        x, conv_w, window_strides=(1,), padding="VALID",
        dimension_numbers=("NCH", "OIH", "NCH"))
    y = jnp.maximum(y + conv_b[None, :, None], 0.0)
    L_out = y.shape[-1]
    y = jnp.max(y[..., :2 * (L_out // 2)].reshape(N, C_out, L_out // 2, 2), axis=-1)
    flat = y.reshape(N, -1)
    h = _selu(flat @ params["w1"].T + params["b1"])
    h = _selu(h @ params["w2"].T + params["b2"])
    return h @ params["w3"].T + params["b3"]


if __name__ == "__main__":
    # Self-consistent small sizing: 1 conv layer, filters_array=[8], K=8,
    # L=39 -> conv L_out=32 -> pool 16 ("mult"=16), fc1 input = 8*16 = 128.
    N, C_in, L = 2, 4, 39
    C_out, K = 8, 8
    L_half = (L - K + 1) // 2
    hidden = 128
    output_dim = 10

    key = jax.random.PRNGKey(0)
    ks = jax.random.split(key, 9)
    params = {
        "conv_w": jax.random.normal(ks[0], (C_out, C_in, K), jnp.float32) * 0.1,
        "conv_b": jax.random.normal(ks[1], (C_out,), jnp.float32) * 0.1,
        "w1": jax.random.normal(ks[2], (hidden, C_out * L_half), jnp.float32) * 0.05,
        "b1": jax.random.normal(ks[3], (hidden,), jnp.float32) * 0.05,
        "w2": jax.random.normal(ks[4], (hidden, hidden), jnp.float32) * 0.05,
        "b2": jax.random.normal(ks[5], (hidden,), jnp.float32) * 0.05,
        "w3": jax.random.normal(ks[6], (output_dim, hidden), jnp.float32) * 0.05,
        "b3": jax.random.normal(ks[7], (output_dim,), jnp.float32) * 0.05,
    }
    x = jax.random.normal(ks[8], (N, C_in, L), jnp.float32)

    ops, dims = prepare_params(params, L)                    # one-time weight prep
    ops = jax.tree_util.tree_map(jax.device_put, ops)
    forward = build_forward(dims)

    out = jax.block_until_ready(forward(x, ops))
    ref = jax.block_until_ready(reference_forward(x, params))

    assert out.shape == (N, output_dim), out.shape
    # bf16 weights/activations with f32 accumulation -> loosened tolerance vs f32 ref.
    assert jnp.allclose(out, ref, atol=2e-2, rtol=2e-2), (out, ref)
    print("KERNEL_OK")
</pallas_src>

<mosaic_0001>
module attributes {stable_mosaic.version = 11 : i64} {
  func.func @kernel(%arg0: memref<2x4x39xf32, #tpu.memory_space<vmem>>, %arg1: memref<4x39x256xbf16, #tpu.memory_space<vmem>>, %arg2: memref<128x384xbf16, #tpu.memory_space<vmem>>, %arg3: memref<4x128xf32, #tpu.memory_space<vmem>>, %arg4: memref<2x128xf32, #tpu.memory_space<vmem>>) attributes {dimension_semantics = [], scalar_prefetch = 0 : i64, scratch_operands = 0 : i64, tpu.core_type = #tpu.core_type<tc>} {
    %c0 = arith.constant 0 : index
    %c0_0 = arith.constant 0 : index
    %c0_1 = arith.constant 0 : index
    %0 = vector.load %arg0[%c0, %c0_0, %c0_1] : memref<2x4x39xf32, #tpu.memory_space<vmem>>, vector<1x4x39xf32>
    %1 = vector.shape_cast %0 : vector<1x4x39xf32> to vector<4x39xf32>
    %c1 = arith.constant 1 : index
    %c0_2 = arith.constant 0 : index
    %c0_3 = arith.constant 0 : index
    %2 = vector.load %arg0[%c1, %c0_2, %c0_3] : memref<2x4x39xf32, #tpu.memory_space<vmem>>, vector<1x4x39xf32>
    %3 = vector.shape_cast %2 : vector<1x4x39xf32> to vector<4x39xf32>
    %4 = vector.extract_strided_slice %1 {offsets = [0, 0], sizes = [1, 39], strides = [1, 1]} : vector<4x39xf32> to vector<1x39xf32>
    %5 = vector.extract_strided_slice %3 {offsets = [0, 0], sizes = [1, 39], strides = [1, 1]} : vector<4x39xf32> to vector<1x39xf32>
    %6 = tpu.concatenate %4, %5 in 0 : vector<1x39xf32>, vector<1x39xf32> -> vector<2x39xf32>
    %7 = arith.truncf %6 : vector<2x39xf32> to vector<2x39xbf16>
    %c0_4 = arith.constant 0 : index
    %c0_5 = arith.constant 0 : index
    %c0_6 = arith.constant 0 : index
    %8 = vector.load %arg1[%c0_4, %c0_5, %c0_6] : memref<4x39x256xbf16, #tpu.memory_space<vmem>>, vector<1x39x256xbf16>
    %9 = vector.shape_cast %8 : vector<1x39x256xbf16> to vector<39x256xbf16>
    %cst = arith.constant dense<0.000000e+00> : vector<2x256xf32>
    %10 = tpu.matmul %7, %9, %cst {dimension_numbers = #tpu.dot_dimension_numbers<[1], [0], [0], [1], [0, 0, 1, 1], [], []>} : vector<2x39xbf16>, vector<39x256xbf16>, vector<2x256xf32> -> vector<2x256xf32>
    %11 = vector.extract_strided_slice %1 {offsets = [1, 0], sizes = [1, 39], strides = [1, 1]} : vector<4x39xf32> to vector<1x39xf32>
    %12 = vector.extract_strided_slice %3 {offsets = [1, 0], sizes = [1, 39], strides = [1, 1]} : vector<4x39xf32> to vector<1x39xf32>
    %13 = tpu.concatenate %11, %12 in 0 : vector<1x39xf32>, vector<1x39xf32> -> vector<2x39xf32>
    %14 = arith.truncf %13 : vector<2x39xf32> to vector<2x39xbf16>
    %c1_7 = arith.constant 1 : index
    %c0_8 = arith.constant 0 : index
    %c0_9 = arith.constant 0 : index
    %15 = vector.load %arg1[%c1_7, %c0_8, %c0_9] : memref<4x39x256xbf16, #tpu.memory_space<vmem>>, vector<1x39x256xbf16>
    %16 = vector.shape_cast %15 : vector<1x39x256xbf16> to vector<39x256xbf16>
    %cst_10 = arith.constant dense<0.000000e+00> : vector<2x256xf32>
    %17 = tpu.matmul %14, %16, %cst_10 {dimension_numbers = #tpu.dot_dimension_numbers<[1], [0], [0], [1], [0, 0, 1, 1], [], []>} : vector<2x39xbf16>, vector<39x256xbf16>, vector<2x256xf32> -> vector<2x256xf32>
    %18 = arith.addf %10, %17 : vector<2x256xf32>
    %19 = vector.extract_strided_slice %1 {offsets = [2, 0], sizes = [1, 39], strides = [1, 1]} : vector<4x39xf32> to vector<1x39xf32>
    %20 = vector.extract_strided_slice %3 {offsets = [2, 0], sizes = [1, 39], strides = [1, 1]} : vector<4x39xf32> to vector<1x39xf32>
    %21 = tpu.concatenate %19, %20 in 0 : vector<1x39xf32>, vector<1x39xf32> -> vector<2x39xf32>
    %22 = arith.truncf %21 : vector<2x39xf32> to vector<2x39xbf16>
    %c2 = arith.constant 2 : index
    %c0_11 = arith.constant 0 : index
    %c0_12 = arith.constant 0 : index
    %23 = vector.load %arg1[%c2, %c0_11, %c0_12] : memref<4x39x256xbf16, #tpu.memory_space<vmem>>, vector<1x39x256xbf16>
    %24 = vector.shape_cast %23 : vector<1x39x256xbf16> to vector<39x256xbf16>
    %cst_13 = arith.constant dense<0.000000e+00> : vector<2x256xf32>
    %25 = tpu.matmul %22, %24, %cst_13 {dimension_numbers = #tpu.dot_dimension_numbers<[1], [0], [0], [1], [0, 0, 1, 1], [], []>} : vector<2x39xbf16>, vector<39x256xbf16>, vector<2x256xf32> -> vector<2x256xf32>
    %26 = arith.addf %18, %25 : vector<2x256xf32>
    %27 = vector.extract_strided_slice %1 {offsets = [3, 0], sizes = [1, 39], strides = [1, 1]} : vector<4x39xf32> to vector<1x39xf32>
    %28 = vector.extract_strided_slice %3 {offsets = [3, 0], sizes = [1, 39], strides = [1, 1]} : vector<4x39xf32> to vector<1x39xf32>
    %29 = tpu.concatenate %27, %28 in 0 : vector<1x39xf32>, vector<1x39xf32> -> vector<2x39xf32>
    %30 = arith.truncf %29 : vector<2x39xf32> to vector<2x39xbf16>
    %c3 = arith.constant 3 : index
    %c0_14 = arith.constant 0 : index
    %c0_15 = arith.constant 0 : index
    %31 = vector.load %arg1[%c3, %c0_14, %c0_15] : memref<4x39x256xbf16, #tpu.memory_space<vmem>>, vector<1x39x256xbf16>
    %32 = vector.shape_cast %31 : vector<1x39x256xbf16> to vector<39x256xbf16>
    %cst_16 = arith.constant dense<0.000000e+00> : vector<2x256xf32>
    %33 = tpu.matmul %30, %32, %cst_16 {dimension_numbers = #tpu.dot_dimension_numbers<[1], [0], [0], [1], [0, 0, 1, 1], [], []>} : vector<2x39xbf16>, vector<39x256xbf16>, vector<2x256xf32> -> vector<2x256xf32>
    %34 = arith.addf %26, %33 : vector<2x256xf32>
    %35 = vector.extract_strided_slice %34 {offsets = [0, 0], sizes = [2, 128], strides = [1, 1]} : vector<2x256xf32> to vector<2x128xf32>
    %36 = vector.extract_strided_slice %34 {offsets = [0, 128], sizes = [2, 128], strides = [1, 1]} : vector<2x256xf32> to vector<2x128xf32>
    %37 = arith.maximumf %35, %36 : vector<2x128xf32>
    %c0_17 = arith.constant 0 : index
    %c0_18 = arith.constant 0 : index
    %38 = vector.load %arg3[%c0_17, %c0_18] : memref<4x128xf32, #tpu.memory_space<vmem>>, vector<1x128xf32>
    %39 = vector.broadcast %38 : vector<1x128xf32> to vector<2x128xf32>
    %40 = arith.addf %37, %39 : vector<2x128xf32>
    %cst_19 = arith.constant 0.000000e+00 : f32
    %41 = vector.broadcast %cst_19 : f32 to vector<2x128xf32>
    %42 = arith.maximumf %40, %41 : vector<2x128xf32>
    %43 = arith.truncf %42 : vector<2x128xf32> to vector<2x128xbf16>
    %c0_20 = arith.constant 0 : index
    %c0_21 = arith.constant 0 : index
    %44 = vector.load %arg2[%c0_20, %c0_21] : memref<128x384xbf16, #tpu.memory_space<vmem>>, vector<128x128xbf16>
    %cst_22 = arith.constant dense<0.000000e+00> : vector<2x128xf32>
    %45 = tpu.matmul %43, %44, %cst_22 {dimension_numbers = #tpu.dot_dimension_numbers<[1], [0], [0], [1], [0, 0, 1, 1], [], []>} : vector<2x128xbf16>, vector<128x128xbf16>, vector<2x128xf32> -> vector<2x128xf32>
    %c1_23 = arith.constant 1 : index
    %c0_24 = arith.constant 0 : index
    %46 = vector.load %arg3[%c1_23, %c0_24] : memref<4x128xf32, #tpu.memory_space<vmem>>, vector<1x128xf32>
    %47 = vector.broadcast %46 : vector<1x128xf32> to vector<2x128xf32>
    %48 = arith.addf %45, %47 : vector<2x128xf32>
    %cst_25 = arith.constant 0.000000e+00 : f32
    %49 = vector.broadcast %cst_25 : f32 to vector<2x128xf32>
    %50 = arith.cmpf ogt, %48, %49 : vector<2x128xf32>
    %cst_26 = arith.constant 0.000000e+00 : f32
    %51 = vector.broadcast %cst_26 : f32 to vector<2x128xf32>
    %52 = arith.minimumf %48, %51 : vector<2x128xf32>
    %53 = math.exp %52 : vector<2x128xf32>
    %cst_27 = arith.constant 1.000000e+00 : f32
    %54 = vector.broadcast %cst_27 : f32 to vector<2x128xf32>
    %55 = arith.subf %53, %54 : vector<2x128xf32>
    %cst_28 = arith.constant 1.67326319 : f32
    %56 = vector.broadcast %cst_28 : f32 to vector<2x128xf32>
    %57 = arith.mulf %56, %55 : vector<2x128xf32>
    %58 = arith.select %50, %48, %57 : vector<2x128xi1>, vector<2x128xf32>
    %cst_29 = arith.constant 1.05070102 : f32
    %59 = vector.broadcast %cst_29 : f32 to vector<2x128xf32>
    %60 = arith.mulf %59, %58 : vector<2x128xf32>
    %61 = arith.truncf %60 : vector<2x128xf32> to vector<2x128xbf16>
    %c0_30 = arith.constant 0 : index
    %c128 = arith.constant 128 : index
    %62 = vector.load %arg2[%c0_30, %c128] : memref<128x384xbf16, #tpu.memory_space<vmem>>, vector<128x128xbf16>
    %cst_31 = arith.constant dense<0.000000e+00> : vector<2x128xf32>
    %63 = tpu.matmul %61, %62, %cst_31 {dimension_numbers = #tpu.dot_dimension_numbers<[1], [0], [0], [1], [0, 0, 1, 1], [], []>} : vector<2x128xbf16>, vector<128x128xbf16>, vector<2x128xf32> -> vector<2x128xf32>
    %c2_32 = arith.constant 2 : index
    %c0_33 = arith.constant 0 : index
    %64 = vector.load %arg3[%c2_32, %c0_33] : memref<4x128xf32, #tpu.memory_space<vmem>>, vector<1x128xf32>
    %65 = vector.broadcast %64 : vector<1x128xf32> to vector<2x128xf32>
    %66 = arith.addf %63, %65 : vector<2x128xf32>
    %cst_34 = arith.constant 0.000000e+00 : f32
    %67 = vector.broadcast %cst_34 : f32 to vector<2x128xf32>
    %68 = arith.cmpf ogt, %66, %67 : vector<2x128xf32>
    %cst_35 = arith.constant 0.000000e+00 : f32
    %69 = vector.broadcast %cst_35 : f32 to vector<2x128xf32>
    %70 = arith.minimumf %66, %69 : vector<2x128xf32>
    %71 = math.exp %70 : vector<2x128xf32>
    %cst_36 = arith.constant 1.000000e+00 : f32
    %72 = vector.broadcast %cst_36 : f32 to vector<2x128xf32>
    %73 = arith.subf %71, %72 : vector<2x128xf32>
    %cst_37 = arith.constant 1.67326319 : f32
    %74 = vector.broadcast %cst_37 : f32 to vector<2x128xf32>
    %75 = arith.mulf %74, %73 : vector<2x128xf32>
    %76 = arith.select %68, %66, %75 : vector<2x128xi1>, vector<2x128xf32>
    %cst_38 = arith.constant 1.05070102 : f32
    %77 = vector.broadcast %cst_38 : f32 to vector<2x128xf32>
    %78 = arith.mulf %77, %76 : vector<2x128xf32>
    %79 = arith.truncf %78 : vector<2x128xf32> to vector<2x128xbf16>
    %c0_39 = arith.constant 0 : index
    %c256 = arith.constant 256 : index
    %80 = vector.load %arg2[%c0_39, %c256] : memref<128x384xbf16, #tpu.memory_space<vmem>>, vector<128x128xbf16>
    %cst_40 = arith.constant dense<0.000000e+00> : vector<2x128xf32>
    %81 = tpu.matmul %79, %80, %cst_40 {dimension_numbers = #tpu.dot_dimension_numbers<[1], [0], [0], [1], [0, 0, 1, 1], [], []>} : vector<2x128xbf16>, vector<128x128xbf16>, vector<2x128xf32> -> vector<2x128xf32>
    %c3_41 = arith.constant 3 : index
    %c0_42 = arith.constant 0 : index
    %82 = vector.load %arg3[%c3_41, %c0_42] : memref<4x128xf32, #tpu.memory_space<vmem>>, vector<1x128xf32>
    %83 = vector.broadcast %82 : vector<1x128xf32> to vector<2x128xf32>
    %84 = arith.addf %81, %83 : vector<2x128xf32>
    %c0_43 = arith.constant 0 : index
    %c0_44 = arith.constant 0 : index
    %85 = vector.load %arg4[%c0_43, %c0_44] : memref<2x128xf32, #tpu.memory_space<vmem>>, vector<2x128xf32>
    tpu.vector_store %arg4[%c0_43, %c0_44], %84 {strides = array<i32>} : memref<2x128xf32, #tpu.memory_space<vmem>>, vector<2x128xf32>,
    return
  }
}

</mosaic_0001>

<bundles_post_ra>
// kernel: forward.1
= control target key start
LH: loop header
LB: loop body
LE: loop exit
PB: predicated region body
PF: predicated region fallthrough
CT: control target
= control target key end

     0   :  { %vm73_vm0 = vcmask 1042432   ;;  %vm74_vm1 = vcmask 1043456   ;;  %v994_v2 = vmov 65535   ;;  %v995_v10 = vmov 0   ;;  %s1241_s0 = inlined_call_operand.vmem [shape: f32[2,4,39], index: 0, kind: input, shape index: {}]   ;;  %s1242_s1 = inlined_call_operand.vmem [shape: bf16[4,39,256], index: 1, kind: input, shape index: {}]   ;;  %s1243_s2 = inlined_call_operand.vmem [shape: bf16[128,384], index: 2, kind: input, shape index: {}]   ;;  %s1244_s3 = inlined_call_operand.vmem [shape: f32[4,128], index: 3, kind: input, shape index: {}]   ;;  %s1245_s4 = inlined_call_operand.hbm [shape: f32[2,128], index: 4, kind: output, shape index: {}]  }
   0x1   :  { %v751_v0 = vld [vmem:[%s1242_s1 + $0x48] sm:$0xff]  ;;  %v75_v3 = vsel %vm73_vm0, 4294967295, %v994_v2  ;;  %v914_v8 = vld [vmem:[%s1242_s1 + $0x3c] ss:$8 sps:$4 sm:$0xff]   ;;  %v1037_v9 = vld [vmem:[%s1241_s0] sm:$0xf]  ;;  %115 = vmatprep.mubr.bf16.mxu1 %v995_v10  ;;  %277 = vmatprep.mubr.bf16.mxu0 %v995_v10 }
   0x2   :  { %v757_v1 = vcombine.high %v751_v0, %v751_v0  ;;  %v756_v4 = vcombine.low %v751_v0, %v751_v0  ;;  %v1027_v5 = vsel %vm74_vm1, %v75_v3, 0  ;;  %v32_v11 = vld [vmem:[%s1242_s1 + $0x20] sm:$0xff]  ;;  %v770_v12 = vld [vmem:[%s1242_s1 + $0x70] sm:$0xff]  ;;  %v34_v17 = vrot.slane %v1037_v9, 1  ;;  %v782_v36 = vld [vmem:[%s1242_s1 + $0x98] sm:$0xff] }
   0x3   :  { %v916_v13 = vld [vmem:[%s1242_s1 + $0x38] ss:$8 sps:$4 sm:$0xff]   ;;  %v776_v14 = vcombine.high %v770_v12, %v770_v12  ;;  %v775_v15 = vcombine.low %v770_v12, %v770_v12  ;;  %v917_v16 = vld [vmem:[%s1242_s1 + $0x2c] ss:$8 sps:$4 sm:$0xff]   ;;  %v1057_v18 = vld [vmem:[%s1241_s0 + $0x4] sm:$0xf]  ;;  %v764_v19 = vcombine.high %v32_v11, %v32_v11  ;;  %v763_v25 = vcombine.low %v32_v11, %v32_v11 }
   0x4   :  { %v81_v6 = vand.u32 %v757_v1, %v1027_v5  ;;  %v78_v7 = vand.u32 %v756_v4, %v1027_v5  ;;  %vm25_vm2 = vcmask 1040384   ;;  %v927_v21 = vld [vmem:[%s1242_s1 + $0x64] ss:$8 sps:$4 sm:$0xff]   ;;  %v919_v23 = vld [vmem:[%s1242_s1 + $0x28] ss:$8 sps:$4 sm:$0xff]   ;;  %v199_v29 = vrot.slane %v1037_v9, 2 }
   0x5   :  { %v243_v20 = vand.u32 %v776_v14, %v1027_v5  ;;  %v240_v22 = vand.u32 %v775_v15, %v1027_v5  ;;  %v36_v24 = vsel %vm25_vm2, %v34_v17, %v1057_v18  ;;  %v929_v26 = vld [vmem:[%s1242_s1 + $0x60] ss:$8 sps:$4 sm:$0xff]   ;;  %v156_v27 = vand.u32 %v764_v19, %v1027_v5  ;;  %v933_v28 = vld [vmem:[%s1242_s1 + $0x54] ss:$8 sps:$4 sm:$0xff]   ;;  %v935_v34 = vld [vmem:[%s1242_s1 + $0x50] ss:$8 sps:$4 sm:$0xff]  }
   0x6   :  { %93 = vmatprep.subr.bf16.mxu1 %v81_v6  ;;  %v201_v30 = vrot.slane %v1057_v18, 1  ;;  %v23_v31 = vrot.slane %v1057_v18, 7  ;;  %vm69_vm3 = vcmask 318464   ;;  %v37_v32 = vpack.c.bf16 %v36_v24, %v36_v24  ;;  %v926_v33 = vld [vmem:[%s1242_s1 + $0x14] ss:$8 sps:$4 sm:$0xff]  }
   0x7   :  { %94 = vmatpush1.bf16.msra.mxu1 %v78_v7  ;;  %255 = vmatprep.subr.bf16.mxu0 %v243_v20  ;;  %v153_v35 = vand.u32 %v763_v25, %v1027_v5  ;;  %v924_v38 = vld [vmem:[%s1242_s1 + $0x10] ss:$8 sps:$4 sm:$0xff]   ;;  %v932_v39 = vld [vmem:[%s1242_s1 + $0x4] ss:$8 sps:$4 sm:$0xff]   ;;  %v788_v41 = vcombine.high %v782_v36, %v782_v36  ;;  %v930_v42 = vld [vmem:[%s1242_s1] ss:$8 sps:$4 sm:$0xff]   ;;  %v787_v44 = vcombine.low %v782_v36, %v782_v36 }
   0x8   :  { %95 = vmatprep.subr.bf16.mxu1 %v914_v8  ;;  %256 = vmatpush1.bf16.msra.mxu0 %v240_v22  ;;  %v203_v37 = vsel %vm25_vm2, %v199_v29, %v201_v30  ;;  %v26_v43 = vsel %vm25_vm2, %v1037_v9, %v23_v31  ;;  %v940_v47 = vld [vmem:[%s1242_s1 + $0x8c] ss:$8 sps:$4 sm:$0xff]  }
   0x9   :  { %257 = vmatprep.subr.bf16.mxu0 %v927_v21  ;;  %v204_v40 = vpack.c.bf16 %v203_v37, %v203_v37  ;;  %v332_v45 = vand.u32 %v788_v41, %v1027_v5  ;;  %v27_v46 = vpack.c.bf16 %v26_v43, %v26_v43  ;;  %v329_v48 = vand.u32 %v787_v44, %v1027_v5 }
   0xb   :  { %96 = vmatpush1.bf16.msra.mxu1 %v916_v13 }
   0xc   :  { %97 = vmatprep.subr.bf16.mxu1 %v917_v16  ;;  %258 = vmatpush1.bf16.msra.mxu0 %v929_v26 }
   0xd   :  { %259 = vmatprep.subr.bf16.mxu0 %v933_v28 }
   0xf   :  { %98 = vmatpush1.bf16.msra.mxu1 %v919_v23 }
  0x10   :  { %168 = vmatprep.subr.bf16.mxu1 %v156_v27  ;;  %260 = vmatpush1.bf16.msra.mxu0 %v935_v34 }
  0x12   :  { %758 = vmatmul.mubr.msk.bf16.vlgmr.msra.gmra.mxu1 %vm69_vm3, %v37_v32 }
  0x13   :  { %169 = vmatpush1.bf16.msra.mxu1 %v153_v35  ;;  %190 = vmatprep.mubr.bf16.mxu1 %v995_v10 }
  0x14   :  { %170 = vmatprep.subr.bf16.mxu1 %v926_v33  ;;  %777 = vmatmul.mubr.msk.bf16.vlgmr.msra.gmra.mxu0 %vm69_vm3, %v204_v40 }
  0x17   :  { %171 = vmatpush1.bf16.msra.mxu1 %v924_v38 }
  0x18   :  { %172 = vmatprep.subr.bf16.mxu1 %v932_v39 }
  0x1b   :  { %173 = vmatpush1.bf16.msra.mxu1 %v930_v42 }
  0x1c   :  { %344 = vmatprep.subr.bf16.mxu1 %v332_v45 }
  0x1e   :  { %765 = vmatmul.mubr.msk.bf16.vlgmr.msra.gmra.mxu1 %vm69_vm3, %v27_v46 }
  0x1f   :  { %9 = vsyncpa [#allocation3], 0  ;;  %v290_v49 = vrot.slane %v1057_v18, 2  ;;  %345 = vmatpush1.bf16.msra.mxu1 %v329_v48  ;;  %v938_v50 = vld [vmem:[%s1242_s1 + $0x88] ss:$8 sps:$4 sm:$0xff]   ;;  %366 = vmatprep.mubr.bf16.mxu1 %v995_v10  ;;  %v288_v51 = vrot.slane %v1037_v9, 3 }
  0x20   :  { %346 = vmatprep.subr.bf16.mxu1 %v940_v47  ;;  %v943_v52 = vld [vmem:[%s1242_s1 + $0x7c] ss:$8 sps:$4 sm:$0xff]   ;;  %v941_v53 = vld [vmem:[%s1242_s1 + $0x78] ss:$8 sps:$4 sm:$0xff]   ;;  %v944_v56 = vld [vmem:[%s1243_s2 + $0xa8] ss:$12 sps:$4 sm:$0xff]  }
  0x21   :  { %v292_v54 = vsel %vm25_vm2, %v288_v51, %v290_v49  ;;  %v996_v57 = vmov 0.0   ;;  %v945_v58 = vld [vmem:[%s1243_s2 + $0x90] ss:$12 sps:$4 sm:$0xff]   ;;  %v946_v59 = vld [vmem:[%s1243_s2 + $0x78] ss:$12 sps:$4 sm:$0xff]   ;;  %vm997_vm4 = vmmov 0  }
  0x22   :  { %v293_v55 = vpack.c.bf16 %v292_v54, %v292_v54  ;;  %847 = vmatprep.subr.bf16.mxu0 %v996_v57  ;;  %v947_v60 = vld [vmem:[%s1243_s2 + $0x60] ss:$12 sps:$4 sm:$0xff]   ;;  %v948_v61 = vld [vmem:[%s1243_s2 + $0x48] ss:$12 sps:$4 sm:$0xff]   ;;  %v949_v62 = vld [vmem:[%s1243_s2 + $0x30] ss:$12 sps:$4 sm:$0xff]   ;;  %863 = vmatprep.mubr.msk.bf16.mxu0 %vm997_vm4, %v996_v57 }
  0x23   :  { %347 = vmatpush1.bf16.msra.mxu1 %v938_v50  ;;  %848 = vmatpush3.bf16.msra.mxu0 %v944_v56  ;;  %v950_v63 = vld [vmem:[%s1243_s2 + $0x18] ss:$12 sps:$4 sm:$0xff]   ;;  %v951_v0 = vld [vmem:[%s1243_s2] ss:$12 sps:$4 sm:$0xff]   ;;  %v954_v30 = vld [vmem:[%s1243_s2 + $0x7c] ss:$12 sps:$4 sm:$0xff]  }
  0x24   :  { %348 = vmatprep.subr.bf16.mxu1 %v943_v52  ;;  %849 = vmatprep.subr.bf16.mxu0 %v996_v57  ;;  %v952_v1 = vld [vmem:[%s1243_s2 + $0xac] ss:$12 sps:$4 sm:$0xff]   ;;  %v790_v22 = vld [vmem:[%s1244_s3] ss:$0 sm:$0xff]  ;;  %v955_v31 = vld [vmem:[%s1243_s2 + $0x64] ss:$12 sps:$4 sm:$0xff]  }
  0x25   :  { %v953_v29 = vld [vmem:[%s1243_s2 + $0x94] ss:$12 sps:$4 sm:$0xff]   ;;  %v956_v32 = vld [vmem:[%s1243_s2 + $0x4c] ss:$12 sps:$4 sm:$0xff]   ;;  %v958_v34 = vld [vmem:[%s1243_s2 + $0x1c] ss:$12 sps:$4 sm:$0xff]  }
  0x26   :  { %v957_v33 = vld [vmem:[%s1243_s2 + $0x34] ss:$12 sps:$4 sm:$0xff]   ;;  %v959_v35 = vld [vmem:[%s1243_s2 + $0x4] ss:$12 sps:$4 sm:$0xff]   ;;  %s998_s5 = smov [#allocation2]  }
  0x27   :  { %349 = vmatpush1.bf16.msra.mxu1 %v941_v53  ;;  %850 = vmatpush3.bf16.msra.mxu0 %v945_v58  ;;  %v960_v36 = vld [vmem:[%s1243_s2 + $0xb0] ss:$12 sps:$4 sm:$0xff]   ;;  %v791_v37 = vld [vmem:[%s1244_s3 + $0x1] ss:$0 sm:$0xff]  ;;  %v961_v51 = vld [vmem:[%s1243_s2 + $0x98] ss:$12 sps:$4 sm:$0xff]  }
  0x28   :  { %867 = vmatprep.subr.bf16.mxu1 %v996_v57  ;;  %851 = vmatprep.subr.bf16.mxu0 %v996_v57  ;;  %v962_v52 = vld [vmem:[%s1243_s2 + $0x80] ss:$12 sps:$4 sm:$0xff]   ;;  %v963_v53 = vld [vmem:[%s1243_s2 + $0x68] ss:$12 sps:$4 sm:$0xff]   ;;  %v964_v54 = vld [vmem:[%s1243_s2 + $0x50] ss:$12 sps:$4 sm:$0xff]  }
  0x29   :  { %v966_v56 = vld [vmem:[%s1243_s2 + $0x20] ss:$12 sps:$4 sm:$0xff]   ;;  %v967_v58 = vld [vmem:[%s1243_s2 + $0x8] ss:$12 sps:$4 sm:$0xff]   ;;  %s738_s6 = sshll.u32 %s998_s5, 4  ;;  %s739_s6 = int_to_ptr.vmem [resolvable:$true] %s738_s6 }
  0x2a   :  { %789 = vmatmul.mubr.msk.bf16.vlgmr.msra.gmra.mxu1 %vm69_vm3, %v293_v55  ;;  %v965_v55 = vld [vmem:[%s1243_s2 + $0x38] ss:$12 sps:$4 sm:$0xff]   ;;  %s972_s7 = scalar_lea.vmem %s739_s6, 32  ;;  %p977_p1 = scmp.lt.s32.totalorder %s739_s6, %s739_s6 }
  0x2b   :  { %852 = vmatpush3.bf16.msra.mxu0 %v946_v59  ;;  %883 = vmatprep.mubr.msk.bf16.mxu1 %vm997_vm4, %v996_v57  ;;  %v801_v59 = vld [vmem:[%s1244_s3 + $0x2] ss:$0 sm:$0xff]  ;;  %p973_p0 = scmp.ne.s32.totalorder %s739_s6, %s972_s7  ;;  %p978_p2 = scmp.lt.s32.totalorder %s972_s7, %s972_s7 }
  0x2c   :  { %853 = vmatprep.subr.bf16.mxu0 %v996_v57  ;;  %868 = vmatpush3.bf16.msra.mxu1 %v952_v1 }
  0x2d   :  { %869 = vmatprep.subr.bf16.mxu1 %v996_v57  ;;  %p979_p3 = por %p978_p2, %p977_p1 }
  0x2f   :  { %854 = vmatpush3.bf16.msra.mxu0 %v947_v60  ;;  %p980_p4 = pnand %p979_p3, %p973_p0 }
  0x30   :  { %855 = vmatprep.subr.bf16.mxu0 %v996_v57  ;;  %870 = vmatpush3.bf16.msra.mxu1 %v953_v29 }
  0x31   :  { %871 = vmatprep.subr.bf16.mxu1 %v996_v57 }
  0x33   :  { %856 = vmatpush3.bf16.msra.mxu0 %v948_v61 }
  0x34   :  { %857 = vmatprep.subr.bf16.mxu0 %v996_v57  ;;  %872 = vmatpush3.bf16.msra.mxu1 %v954_v30 }
  0x35   :  { %873 = vmatprep.subr.bf16.mxu1 %v996_v57 }
  0x37   :  { %858 = vmatpush3.bf16.msra.mxu0 %v949_v62 }
  0x38   :  { %859 = vmatprep.subr.bf16.mxu0 %v996_v57  ;;  %874 = vmatpush3.bf16.msra.mxu1 %v955_v31 }
  0x39   :  { %875 = vmatprep.subr.bf16.mxu1 %v996_v57 }
  0x3b   :  { %860 = vmatpush3.bf16.msra.mxu0 %v950_v63 }
  0x3c   :  { %861 = vmatprep.subr.bf16.mxu0 %v996_v57  ;;  %876 = vmatpush3.bf16.msra.mxu1 %v956_v32 }
  0x3d   :  { %877 = vmatprep.subr.bf16.mxu1 %v996_v57 }
  0x3f   :  { %862 = vmatpush3.bf16.msra.mxu0 %v951_v0 }
  0x40   :  { %887 = vmatprep.subr.bf16.mxu0 %v996_v57  ;;  %878 = vmatpush3.bf16.msra.mxu1 %v957_v33 }
  0x41   :  { %879 = vmatprep.subr.bf16.mxu1 %v996_v57 }
  0x44   :  { %880 = vmatpush3.bf16.msra.mxu1 %v958_v34 }
  0x45   :  { %881 = vmatprep.subr.bf16.mxu1 %v996_v57 }
  0x48   :  { %882 = vmatpush3.bf16.msra.mxu1 %v959_v35 }
  0xd2   :  { %v117_v2 = vpop.f32.mrf.mxu1 }
  0xd4   :  { %v119_v3 = vpop.f32.mrf.mxu1  ;;  %v279_v5 = vpop.f32.mrf.mxu0 }
  0xd6   :  { %v121_v4 = vpop.f32.mrf.mxu1  ;;  %v281_v7 = vpop.f32.mrf.mxu0 }
  0xd8   :  { %v122_v6 = vpop.f32.mrf.mxu1  ;;  %v283_v8 = vpop.f32.mrf.mxu0 }
  0xd9   :  { %v811_v8 = vld [vmem:[%s1244_s3 + $0x3] ss:$0 sm:$0xff] }
  0xda   :  { %v284_v9 = vpop.f32.mrf.mxu0 }
  0xde   :  { %v192_v10 = vpop.f32.mrf.mxu1 }
  0xdf   :  { %v193_v14 = vadd.f32 %v192_v10, %v117_v2 }
  0xe0   :  { %v194_v11 = vpop.f32.mrf.mxu1 }
  0xe1   :  { %v195_v15 = vadd.f32 %v194_v11, %v119_v3  ;;  %v286_v17 = vadd.f32 %v279_v5, %v193_v14 }
  0xe2   :  { %v196_v12 = vpop.f32.mrf.mxu1 }
  0xe3   :  { %v287_v18 = vadd.f32 %v281_v7, %v195_v15 }
  0xe4   :  { %v197_v13 = vpop.f32.mrf.mxu1 }
  0xea   :  { %v368_v16 = vpop.f32.mrf.mxu1 }
  0xeb   :  { %v375_v20 = vadd.f32 %v368_v16, %v286_v17 }
  0xec   :  { %v370_v19 = vpop.f32.mrf.mxu1 }
  0xed   :  { %v376_v21 = vadd.f32 %v370_v19, %v287_v18 }
  0xee   :  { %v372_v23 = vpop.f32.mrf.mxu1 }
  0xef   :  { %v377_v24 = vmax.f32 %v375_v20, %v376_v21 }
  0xf0   :  { %v373_v25 = vpop.f32.mrf.mxu1 }
  0xf1   :  { %v383_v26 = vadd.f32 %v790_v22, %v377_v24 }
  0xf3   :  { %v384_v27 = vmax.f32 %v383_v26, 0.0 }
  0xf5   :  { %v385_v28 = vpack.c.bf16 %v384_v27, %v384_v27 }
  0xf7   :  { %864 = vmatmul.mubr.bf16.vlgmr.msra.gmra.mxu0 %v385_v28 }
  0xf8   :  { %903 = vmatprep.mubr.msk.bf16.mxu0 %vm997_vm4, %v996_v57  ;;  %888 = vmatpush3.bf16.msra.mxu0 %v960_v36 }
  0xf9   :  { %889 = vmatprep.subr.bf16.mxu0 %v996_v57 }
  0xfc   :  { %890 = vmatpush3.bf16.msra.mxu0 %v961_v51 }
  0xfd   :  { %891 = vmatprep.subr.bf16.mxu0 %v996_v57 }
 0x100   :  { %892 = vmatpush3.bf16.msra.mxu0 %v962_v52 }
 0x101   :  { %893 = vmatprep.subr.bf16.mxu0 %v996_v57 }
 0x104   :  { %894 = vmatpush3.bf16.msra.mxu0 %v963_v53 }
 0x105   :  { %895 = vmatprep.subr.bf16.mxu0 %v996_v57 }
 0x108   :  { %896 = vmatpush3.bf16.msra.mxu0 %v964_v54 }
 0x109   :  { %897 = vmatprep.subr.bf16.mxu0 %v996_v57 }
 0x10c   :  { %898 = vmatpush3.bf16.msra.mxu0 %v965_v55 }
 0x10d   :  { %899 = vmatprep.subr.bf16.mxu0 %v996_v57 }
 0x110   :  { %900 = vmatpush3.bf16.msra.mxu0 %v966_v56 }
 0x111   :  { %901 = vmatprep.subr.bf16.mxu0 %v996_v57 }
 0x114   :  { %902 = vmatpush3.bf16.msra.mxu0 %v967_v58 }
 0x1b7   :  { %v489_v38 = vpop.f32.mrf.mxu0 }
 0x1b8   :  { %v490_v39 = vadd.f32 %v791_v37, %v489_v38 }
 0x1b9   :  { %v865_v40 = vpop.f32.mrf.mxu0 }
 0x1ba   :  { %v496_v41 = vmin.f32 %v490_v39, 0.0  ;;  %vm495_vm5 = vcmp.gt.f32.partialorder %v490_v39, 0.0 }
 0x1bb   :  { %v492_v42 = vpop.f32.mrf.mxu0 }
 0x1bc   :  { %v497_v43 = vmul.f32 1.442695, %v496_v41 }
 0x1bd   :  { %v866_v44 = vpop.f32.mrf.mxu0 }
 0x1be   :  { %968 = vpow2.f32 %v497_v43 }
 0x1cb   :  { %v969_v45 = vpop.eup %968 }
 0x1cc   :  { %v800_v46 = vadd.f32 -1.0, %v969_v45 }
 0x1ce   :  { %v500_v47 = vmul.f32 1.6732632, %v800_v46 }
 0x1d0   :  { %v501_v48 = vsel %vm495_vm5, %v490_v39, %v500_v47 }
 0x1d1   :  { %v502_v49 = vmul.f32 1.050701, %v501_v48 }
 0x1d3   :  { %v503_v50 = vpack.c.bf16 %v502_v49, %v502_v49 }
 0x1d5   :  { %884 = vmatmul.mubr.bf16.vlgmr.msra.gmra.mxu1 %v503_v50 }
 0x295   :  { %v607_v60 = vpop.f32.mrf.mxu1 }
 0x296   :  { %v608_v61 = vadd.f32 %v801_v59, %v607_v60 }
 0x297   :  { %v885_v62 = vpop.f32.mrf.mxu1 }
 0x298   :  { %v614_v63 = vmin.f32 %v608_v61, 0.0  ;;  %vm613_vm6 = vcmp.gt.f32.partialorder %v608_v61, 0.0 }
 0x299   :  { %v610_v0 = vpop.f32.mrf.mxu1 }
 0x29a   :  { %v615_v1 = vmul.f32 1.442695, %v614_v63 }
 0x29b   :  { %v886_v2 = vpop.f32.mrf.mxu1 }
 0x29c   :  { %970 = vpow2.f32 %v615_v1 }
 0x2a9   :  { %v971_v3 = vpop.eup %970 }
 0x2aa   :  { %v810_v4 = vadd.f32 -1.0, %v971_v3 }
 0x2ac   :  { %v618_v57 = vmul.f32 1.6732632, %v810_v4 }
 0x2ae   :  { %v619_v5 = vsel %vm613_vm6, %v608_v61, %v618_v57 }
 0x2af   :  { %v620_v6 = vmul.f32 1.050701, %v619_v5 }
 0x2b1   :  { %v621_v7 = vpack.c.bf16 %v620_v6, %v620_v6 }
 0x2b3   :  { %904 = vmatmul.mubr.bf16.vlgmr.msra.gmra.mxu0 %v621_v7 }
 0x373   :  { %v725_v9 = vpop.f32.mrf.mxu0 }
 0x374   :  { %v726_v10 = vadd.f32 %v811_v8, %v725_v9 }
 0x375   :  { %v905_v11 = vpop.f32.mrf.mxu0 }
 0x376   :  { %731 = vst [vmem:[#allocation2] sm:$0x3] %v726_v10 }
 0x377   :  { %v728_v12 = vpop.f32.mrf.mxu0 }
 0x378   :  { %983 = shalt.err (!%p980_p4)
}
 0x379   :  { %741 = dma.vmem_to_hbm [thread:$0]  %s739_s6, 32, %s1245_s4, [#allocation3]   ;;  %v906_v13 = vpop.f32.mrf.mxu0 }
 0x37a   :  { %992 = dma.done.wait [#allocation3], 32  }
 0x37b   :  { %993 = vsyncadd [#allocation3], 4294967264 }
 0x37c   :  { %745 = vsyncpa [#allocation3], 1 }

</bundles_post_ra>
